<compile_context>
chip_gen: v7x
topology: tpu7x:2x2x1
jax: 0.10.0
libtpu: 0.0.40
codegen_flags: <defaults>
</compile_context>

<pallas_src>
import jax
import jax.numpy as jnp
from jax.experimental import pallas as pl
from jax.experimental.pallas import tpu as pltpu

H1, H2 = 64, 32
LANE = 128


def mlp_kernel(x_ref, w1_ref, b1_ref, w2_ref, b2_ref, w3_ref, b3_ref, o_ref):
    # x_ref: (tile_b, D) tile of the batch; weights/biases fully VMEM-resident.
    x = x_ref[...]

    # layer1: Linear(D, 64) + ReLU  (MXU, f32 accumulation)
    h1 = jnp.dot(x, w1_ref[...], preferred_element_type=jnp.float32) + b1_ref[...]
    h1 = jnp.maximum(h1, 0.0)

    # layer2: Linear(64, 32) + ReLU (MXU)
    h2 = jnp.dot(h1, w2_ref[...], preferred_element_type=jnp.float32) + b2_ref[...]
    h2 = jnp.maximum(h2, 0.0)

    # layer3: Linear(32, 1) on VPU/XLU (off the MXU, off the DMA critical path).
    # Transpose the (tile_b, 32) tile so batch sits on the lane axis, broadcast-mul
    # by the (32, 1) weight column and reduce over sublanes -> lane-dense (1, tile_b).
    h2_t = h2.T                                                  # (32, tile_b)
    out = jnp.sum(h2_t * w3_ref[...], axis=0, keepdims=True)     # (1, tile_b)
    out = out + b3_ref[...]                                      # broadcast (1, 1)

    o_ref[...] = out.astype(o_ref.dtype)


def _round_up(v, m):
    return ((v + m - 1) // m) * m


def _cdiv(a, b):
    return -(-a // b)


def _tpu_caps():
    """Physical VMEM per core and whether the chip has 2 TensorCores (v7x-style)."""
    vmem_bytes = 64 << 20  # conservative fallback (v7x per-TC VMEM)
    try:
        vmem_bytes = int(pltpu.get_tpu_info().vmem_capacity_bytes)
    except Exception:
        pass
    kind = ""
    try:
        kind = jax.devices()[0].device_kind.lower()
    except Exception:
        pass
    # v7x: 2 TCs/chip and 64 MiB VMEM/TC; v5e/v6e: single TC, 128 MiB VMEM.
    multi_tc = ("7" in kind) or (vmem_bytes <= (64 << 20))
    return vmem_bytes, multi_tc


def _weights_vmem_bytes(D):
    # Lane-padded, double-buffered estimate for the resident weights/biases.
    return 2 * 4 * (_round_up(D, 8) * LANE      # w1 (D, 64): 64 lanes pad to 128
                    + _round_up(H1, 8) * LANE   # w2 (64, 32)
                    + _round_up(H2, 8) * LANE   # w3 (32, 1)
                    + 3 * 8 * LANE)             # b1, b2, b3


def _choose_tile(B, D, vmem_cap_bytes, multi_tc, requested_tile_b=None):
    """Byte-budgeted batch tile, gen-gated for single-TC vs 2-TC chips."""
    row_x = 4 * _round_up(D, LANE)            # lane-padded bytes per x row
    row_h = 4 * LANE                          # each h1/h2 row pads to 128 lanes
    per_row = 2 * row_x + 3 * row_h + 64      # dbuf x + h1 + h2 + h2.T + out slack
    budget = max(vmem_cap_bytes - _weights_vmem_bytes(D) - (6 << 20), 1 << 20)

    # Target ~4 MiB of (single-buffered) x per grid step; cap by VMEM fit + 8K rows.
    tb = (4 << 20) // row_x
    tb = min(tb, budget // per_row, 8192)
    if requested_tile_b is not None:
        tb = min(tb, requested_tile_b)
    tb = max(128, (tb // 128) * 128)

    if (not multi_tc) or B < 256:
        # Single-TC (v5e/v6e) or tiny batch: one big tile; ragged batches handled
        # by a partial trailing block (no padding copy of x).
        if B <= tb:
            return _round_up(max(B, 1), 8)
        return tb

    # v7x-style (2 TCs): keep the "parallel" grid >= 2 and even so both cores work.
    if B <= tb:
        tb = max(128, _round_up(_cdiv(B, 2), 128))
    nt = _cdiv(B, tb)
    if nt > 1 and nt % 2 == 1:
        t = tb
        while t > 128 and _cdiv(B, t) % 2 == 1:
            t -= 128
        if _cdiv(B, t) % 2 == 0:
            tb = t
    return tb


def auc_classification_forward(x, params, *, tile_b=None):
    """x: (B, D) float32. params: w1 (D,64), b1 (1,64), w2 (64,32), b2 (1,32),
    w3 (32,1), b3 (1,1). Returns (B, 1) float32."""
    B, D = x.shape
    vmem_bytes, multi_tc = _tpu_caps()

    tb = _choose_tile(B, D, vmem_bytes, multi_tc, tile_b)
    num_tiles = _cdiv(B, tb)
    # Output slab is tiny (4 bytes/row); over-allocating it costs nothing, unlike
    # padding x (which would re-read/re-write all of x in HBM).
    B_out = num_tiles * tb

    # VMEM budget with lane padding: double-buffered x tile + weights + h1/h2/h2.T
    # intermediates + lane-dense output blocks, plus compiler-scratch margin.
    row_x = 4 * _round_up(D, LANE)
    row_h = 4 * LANE
    per_step = tb * (2 * row_x + 3 * row_h) + 2 * 8 * _round_up(tb, LANE) * 4
    est_vmem = _weights_vmem_bytes(D) + per_step + (4 << 20)

    # Gen-gated cap: ~3/4 of physical VMEM (~48 MiB on v7x, ~96 MiB on v5e/v6e).
    cap = max(32 << 20, min((vmem_bytes * 3) // 4, 100 << 20))
    vmem_limit = int(min(max(est_vmem, 32 << 20), cap))

    out_row = pl.pallas_call(
        mlp_kernel,
        out_shape=jax.ShapeDtypeStruct((1, B_out), jnp.float32),
        grid_spec=pltpu.PrefetchScalarGridSpec(
            num_scalar_prefetch=0,
            grid=(num_tiles,),
            in_specs=[
                pl.BlockSpec((tb, D), lambda i: (i, 0)),    # x tile (partial last ok)
                pl.BlockSpec((D, H1), lambda i: (0, 0)),    # w1 (resident)
                pl.BlockSpec((1, H1), lambda i: (0, 0)),    # b1
                pl.BlockSpec((H1, H2), lambda i: (0, 0)),   # w2
                pl.BlockSpec((1, H2), lambda i: (0, 0)),    # b2
                pl.BlockSpec((H2, 1), lambda i: (0, 0)),    # w3 (column)
                pl.BlockSpec((1, 1), lambda i: (0, 0)),     # b3
            ],
            # Lane-dense output: each grid step writes a (1, tb) lane window.
            out_specs=pl.BlockSpec((1, tb), lambda i: (0, i)),
        ),
        compiler_params=pltpu.CompilerParams(
            dimension_semantics=("parallel",),
            vmem_limit_bytes=vmem_limit,
        ),
    )(x, params["w1"], params["b1"], params["w2"], params["b2"],
      params["w3"], params["b3"])

    # Back to torch-convention (B, 1); lanes past B (partial-block garbage) dropped.
    # Safe because every op in the kernel is row-wise (no cross-row reduction).
    return out_row[0, :B].reshape(B, 1)


def init_params(key, input_dim):
    """Deterministic init mimicking torch.nn.Linear defaults:
    U(-1/sqrt(fan_in), 1/sqrt(fan_in)) for weight and bias.
    Weights stored as (in_features, out_features); w3 as a (32, 1) column."""
    dims = [(input_dim, H1), (H1, H2), (H2, 1)]
    params = {}
    keys = jax.random.split(key, 2 * len(dims))
    for idx, (fan_in, fan_out) in enumerate(dims):
        bound = 1.0 / jnp.sqrt(jnp.float32(fan_in))
        w = jax.random.uniform(keys[2 * idx], (fan_in, fan_out),
                               minval=-bound, maxval=bound, dtype=jnp.float32)
        b = jax.random.uniform(keys[2 * idx + 1], (1, fan_out),
                               minval=-bound, maxval=bound, dtype=jnp.float32)
        params[f"w{idx + 1}"] = w
        params[f"b{idx + 1}"] = b
    return params


def reference_forward(x, params):
    h1 = jnp.maximum(x @ params["w1"] + params["b1"], 0.0)
    h2 = jnp.maximum(h1 @ params["w2"] + params["b2"], 0.0)
    return h2 @ params["w3"] + params["b3"]


if __name__ == "__main__":
    key = jax.random.PRNGKey(0)
    k_x, k_p = jax.random.split(key)

    batch, input_dim = 16, 32
    x = jax.random.normal(k_x, (batch, input_dim), dtype=jnp.float32)
    params = init_params(k_p, input_dim)

    out = jax.block_until_ready(auc_classification_forward(x, params))
    ref = reference_forward(x, params)
    assert out.shape == (batch, 1)
    assert jnp.allclose(out, ref, atol=1e-5, rtol=1e-5), "mismatch vs reference"

    # Multi-tile / ragged-batch path: partial trailing block, no padding copy of x.
    batch2 = 300
    x2 = jax.random.normal(jax.random.PRNGKey(1), (batch2, input_dim),
                           dtype=jnp.float32)
    out2 = jax.block_until_ready(auc_classification_forward(x2, params, tile_b=256))
    ref2 = reference_forward(x2, params)
    assert out2.shape == (batch2, 1)
    assert jnp.allclose(out2, ref2, atol=1e-5, rtol=1e-5), "mismatch vs reference (ragged)"

    print("KERNEL_OK")
</pallas_src>

<mosaic_0001>
module attributes {stable_mosaic.version = 11 : i64} {
  func.func @mlp_kernel(%arg0: i32, %arg1: memref<16x32xf32, #tpu.memory_space<vmem>>, %arg2: memref<32x64xf32, #tpu.memory_space<vmem>>, %arg3: memref<1x64xf32, #tpu.memory_space<vmem>>, %arg4: memref<64x32xf32, #tpu.memory_space<vmem>>, %arg5: memref<1x32xf32, #tpu.memory_space<vmem>>, %arg6: memref<32x1xf32, #tpu.memory_space<vmem>>, %arg7: memref<1x1xf32, #tpu.memory_space<vmem>>, %arg8: memref<1x16xf32, #tpu.memory_space<vmem>>) attributes {dimension_semantics = [#tpu.dimension_semantics<parallel>], iteration_bounds = array<i64: 1>, scalar_prefetch = 0 : i64, scratch_operands = 0 : i64, tpu.core_type = #tpu.core_type<tc>, window_params = [{transform_indices = @transform_0, window_bounds = array<i64: 16, 32>}, {pipeline_mode = #tpu.pipeline_mode<synchronous>, transform_indices = @transform_1, window_bounds = array<i64: 32, 64>}, {pipeline_mode = #tpu.pipeline_mode<synchronous>, transform_indices = @transform_2, window_bounds = array<i64: 1, 64>}, {pipeline_mode = #tpu.pipeline_mode<synchronous>, transform_indices = @transform_3, window_bounds = array<i64: 64, 32>}, {pipeline_mode = #tpu.pipeline_mode<synchronous>, transform_indices = @transform_4, window_bounds = array<i64: 1, 32>}, {pipeline_mode = #tpu.pipeline_mode<synchronous>, transform_indices = @transform_5, window_bounds = array<i64: 32, 1>}, {pipeline_mode = #tpu.pipeline_mode<synchronous>, transform_indices = @transform_6, window_bounds = array<i64: 1, 1>}, {transform_indices = @transform_7, window_bounds = array<i64: 1, 16>}]} {
    %c0 = arith.constant 0 : index
    %c0_0 = arith.constant 0 : index
    %0 = vector.load %arg1[%c0, %c0_0] : memref<16x32xf32, #tpu.memory_space<vmem>>, vector<16x32xf32>
    %c0_1 = arith.constant 0 : index
    %c0_2 = arith.constant 0 : index
    %1 = vector.load %arg2[%c0_1, %c0_2] : memref<32x64xf32, #tpu.memory_space<vmem>>, vector<32x64xf32>
    %cst = arith.constant dense<0.000000e+00> : vector<16x64xf32>
    %2 = tpu.matmul %0, %1, %cst {dimension_numbers = #tpu.dot_dimension_numbers<[1], [0], [0], [1], [0, 0, 1, 1], [], []>} : vector<16x32xf32>, vector<32x64xf32>, vector<16x64xf32> -> vector<16x64xf32>
    %c0_3 = arith.constant 0 : index
    %c0_4 = arith.constant 0 : index
    %3 = vector.load %arg3[%c0_3, %c0_4] : memref<1x64xf32, #tpu.memory_space<vmem>>, vector<1x64xf32>
    %4 = vector.broadcast %3 : vector<1x64xf32> to vector<16x64xf32>
    %5 = arith.addf %2, %4 : vector<16x64xf32>
    %cst_5 = arith.constant 0.000000e+00 : f32
    %6 = vector.broadcast %cst_5 : f32 to vector<16x64xf32>
    %7 = arith.maximumf %5, %6 : vector<16x64xf32>
    %c0_6 = arith.constant 0 : index
    %c0_7 = arith.constant 0 : index
    %8 = vector.load %arg4[%c0_6, %c0_7] : memref<64x32xf32, #tpu.memory_space<vmem>>, vector<64x32xf32>
    %cst_8 = arith.constant dense<0.000000e+00> : vector<16x32xf32>
    %9 = tpu.matmul %7, %8, %cst_8 {dimension_numbers = #tpu.dot_dimension_numbers<[1], [0], [0], [1], [0, 0, 1, 1], [], []>} : vector<16x64xf32>, vector<64x32xf32>, vector<16x32xf32> -> vector<16x32xf32>
    %c0_9 = arith.constant 0 : index
    %c0_10 = arith.constant 0 : index
    %10 = vector.load %arg5[%c0_9, %c0_10] : memref<1x32xf32, #tpu.memory_space<vmem>>, vector<1x32xf32>
    %11 = vector.broadcast %10 : vector<1x32xf32> to vector<16x32xf32>
    %12 = arith.addf %9, %11 : vector<16x32xf32>
    %cst_11 = arith.constant 0.000000e+00 : f32
    %13 = vector.broadcast %cst_11 : f32 to vector<16x32xf32>
    %14 = arith.maximumf %12, %13 : vector<16x32xf32>
    %15 = tpu.transpose %14, [1, 0] : vector<16x32xf32> -> vector<32x16xf32>
    %c0_12 = arith.constant 0 : index
    %c0_13 = arith.constant 0 : index
    %16 = vector.load %arg6[%c0_12, %c0_13] : memref<32x1xf32, #tpu.memory_space<vmem>>, vector<32x1xf32>
    %17 = vector.broadcast %16 : vector<32x1xf32> to vector<32x16xf32>
    %18 = arith.mulf %15, %17 : vector<32x16xf32>
    %cst_14 = arith.constant dense<0.000000e+00> : vector<16xf32>
    %19 = vector.multi_reduction <add>, %18, %cst_14 [0] : vector<32x16xf32> to vector<16xf32>
    %20 = vector.shape_cast %19 : vector<16xf32> to vector<1x16xf32>
    %c0_15 = arith.constant 0 : index
    %c0_16 = arith.constant 0 : index
    %21 = vector.load %arg7[%c0_15, %c0_16] : memref<1x1xf32, #tpu.memory_space<vmem>>, vector<1x1xf32>
    %22 = vector.broadcast %21 : vector<1x1xf32> to vector<1x16xf32>
    %23 = arith.addf %20, %22 : vector<1x16xf32>
    %c0_17 = arith.constant 0 : index
    %c0_18 = arith.constant 0 : index
    %24 = vector.load %arg8[%c0_17, %c0_18] : memref<1x16xf32, #tpu.memory_space<vmem>>, vector<1x16xf32>
    tpu.vector_store %arg8[%c0_17, %c0_18], %23 {strides = array<i32>} : memref<1x16xf32, #tpu.memory_space<vmem>>, vector<1x16xf32>,
    return
  }
  func.func @transform_0(%arg0: i32) -> (i32, i32) {
    %c0_i32 = arith.constant 0 : i32
    %c0_i32_0 = arith.constant 0 : i32
    return %arg0, %c0_i32 : i32, i32
  }
  func.func @transform_1(%arg0: i32) -> (i32, i32) {
    %c0_i32 = arith.constant 0 : i32
    %c0_i32_0 = arith.constant 0 : i32
    %c0_i32_1 = arith.constant 0 : i32
    return %c0_i32, %c0_i32_0 : i32, i32
  }
  func.func @transform_2(%arg0: i32) -> (i32, i32) {
    %c0_i32 = arith.constant 0 : i32
    %c0_i32_0 = arith.constant 0 : i32
    %c0_i32_1 = arith.constant 0 : i32
    return %c0_i32, %c0_i32_0 : i32, i32
  }
  func.func @transform_3(%arg0: i32) -> (i32, i32) {
    %c0_i32 = arith.constant 0 : i32
    %c0_i32_0 = arith.constant 0 : i32
    %c0_i32_1 = arith.constant 0 : i32
    return %c0_i32, %c0_i32_0 : i32, i32
  }
  func.func @transform_4(%arg0: i32) -> (i32, i32) {
    %c0_i32 = arith.constant 0 : i32
    %c0_i32_0 = arith.constant 0 : i32
    %c0_i32_1 = arith.constant 0 : i32
    return %c0_i32, %c0_i32_0 : i32, i32
  }
  func.func @transform_5(%arg0: i32) -> (i32, i32) {
    %c0_i32 = arith.constant 0 : i32
    %c0_i32_0 = arith.constant 0 : i32
    %c0_i32_1 = arith.constant 0 : i32
    return %c0_i32, %c0_i32_0 : i32, i32
  }
  func.func @transform_6(%arg0: i32) -> (i32, i32) {
    %c0_i32 = arith.constant 0 : i32
    %c0_i32_0 = arith.constant 0 : i32
    %c0_i32_1 = arith.constant 0 : i32
    return %c0_i32, %c0_i32_0 : i32, i32
  }
  func.func @transform_7(%arg0: i32) -> (i32, i32) {
    %c0_i32 = arith.constant 0 : i32
    %c0_i32_0 = arith.constant 0 : i32
    return %c0_i32, %arg0 : i32, i32
  }
}

</mosaic_0001>

<bundles_post_ra>
// kernel: tpu_custom_call.1
= control target key start
LH: loop header
LB: loop body
LE: loop exit
PB: predicated region body
PF: predicated region fallthrough
CT: control target
= control target key end

     0   :  { %s550_s0 = inlined_call_operand.vmem [shape: f32[16,32], index: 0, kind: input, shape index: {}]   ;;  %s551_s1 = inlined_call_operand.vmem [shape: f32[32,64], index: 1, kind: input, shape index: {}]   ;;  %s552_s2 = inlined_call_operand.vmem [shape: f32[1,64], index: 2, kind: input, shape index: {}]   ;;  %s553_s3 = inlined_call_operand.vmem [shape: f32[64,32], index: 3, kind: input, shape index: {}]   ;;  %s554_s4 = inlined_call_operand.vmem [shape: f32[1,32], index: 4, kind: input, shape index: {}]   ;;  %s555_s5 = inlined_call_operand.vmem [shape: f32[32,1], index: 5, kind: input, shape index: {}]   ;;  %s556_s6 = inlined_call_operand.<no memory space> [shape: f32[1,1], index: 6, kind: input, shape index: {}]   ;;  %s557_s7 = inlined_call_operand.hbm [shape: f32[1,16], index: 7, kind: output, shape index: {}]  }
   0x1   :  { %v12_v0 = vstv %s556_s6 }
   0x2   :  { %13 = vst [vmem:[#allocation2] sm:$0x1] %v12_v0 }
   0x3   :  { %v31_v1 = vld [vmem:[%s551_s1] sm:$0xff]  ;;  %v32_v2 = vld [vmem:[%s551_s1 + $0x8] sm:$0xff]  ;;  %v33_v3 = vld [vmem:[%s551_s1 + $0x10] sm:$0xff]  ;;  %vm42_vm0 = vcmask 261120  }
   0x4   :  { %v378_v4 = vpack.c.bf16 %v32_v2, %v31_v1  ;;  %v34_v5 = vld [vmem:[%s551_s1 + $0x18] sm:$0xff]  ;;  %v29_v6 = vld [vmem:[%s550_s0] sm:$0xff]  ;;  %v127_v9 = vld [vmem:[%s553_s3 + $0x8] sm:$0xff] }
   0x5   :  { %v382_v7 = vpack.c.bf16 %v34_v5, %v33_v3  ;;  %356 = vmatprep.mubr.msk.f32.mxu0 %vm42_vm0, %v29_v6  ;;  %v126_v8 = vld [vmem:[%s553_s3] sm:$0xff]  ;;  %v128_v10 = vld [vmem:[%s553_s3 + $0x10] sm:$0xff]  ;;  %v129_v12 = vld [vmem:[%s553_s3 + $0x18] sm:$0xff] }
   0x6   :  { %379 = vmatprep.subr.bf16.mxu0 %v378_v4  ;;  %v386_v11 = vpack.c.bf16 %v127_v9, %v126_v8  ;;  %v390_v13 = vpack.c.bf16 %v129_v12, %v128_v10  ;;  %v130_v14 = vld [vmem:[%s553_s3 + $0x20] sm:$0xff]  ;;  %v131_v15 = vld [vmem:[%s553_s3 + $0x28] sm:$0xff] }
   0x7   :  { %381 = vmatpush3.bf16.msra.mxu0 %v378_v4 }
   0x8   :  { %14 = vsyncpa [#allocation4], 0  ;;  %383 = vmatprep.subr.bf16.mxu0 %v382_v7  ;;  %387 = vmatprep.subr.bf16.mxu1 %v386_v11  ;;  %v394_v16 = vpack.c.bf16 %v131_v15, %v130_v14  ;;  %v30_v17 = vld [vmem:[%s550_s0 + $0x8] sm:$0xff]  ;;  %v132_v18 = vld [vmem:[%s553_s3 + $0x30] sm:$0xff]  ;;  %v431_v22 = vmov 0   ;;  %vm141_vm1 = vcmask 523264   ;;  %v305_v59 = vlaneseq }
   0x9   :  { %389 = vmatpush3.bf16.msra.mxu1 %v386_v11  ;;  %v133_v19 = vld [vmem:[%s553_s3 + $0x38] sm:$0xff]  ;;  %v259_v21 = vld [vmem:[%s555_s5 + $0x10] sm:$0xff]  ;;  %406 = vset.pattern.permute.xlu1 %v431_v22  ;;  %v326_v24 = vld [vmem:[%s552_s2] ss:$0 sm:$0xff]  ;;  %vm285_vm2 = vcmask 130048   ;;  %vm310_vm3 = vcmask 122880  }
   0xa   :  { %391 = vmatprep.subr.bf16.mxu1 %v390_v13  ;;  %v398_v20 = vpack.c.bf16 %v133_v19, %v132_v18  ;;  %405 = vset.pattern.permute.xlu0 %v431_v22  ;;  %v260_v23 = vld [vmem:[%s555_s5 + $0x18] sm:$0xff]  ;;  %v257_v31 = vld [vmem:[%s555_s5] sm:$0xff]  ;;  %v258_v32 = vld [vmem:[%s555_s5 + $0x8] sm:$0xff]  ;;  %v306_v62 = vshrl.u32 %v305_v59, 7 }
   0xb   :  { %385 = vmatpush3.bf16.msra.mxu0 %v382_v7  ;;  %273 = vperm.xlu1 %406, %v259_v21   ;;  %v299_v33 = vld [vmem:[#allocation2] sm:$0x1] }
   0xc   :  { %263 = vperm.xlu0 %405, %v257_v31   ;;  %v329_v34 = vld [vmem:[%s554_s4] ss:$0 sm:$0xff]  ;;  %v307_v1 = vsub.s32 0, %v306_v62  ;;  %s432_s4 = smov [#allocation3]  }
   0xd   :  { %393 = vmatpush3.bf16.msra.mxu1 %v390_v13  ;;  %s318_s5 = sshll.u32 %s432_s4, 4  ;;  %s319_s5 = int_to_ptr.vmem [resolvable:$true] %s318_s5 }
   0xe   :  { %357 = vmatmul.mubr.msk.f32.vlgmr.msra.gmra.mrb[0].mxu0 %vm42_vm0, %v30_v17  ;;  %395 = vmatprep.subr.bf16.mxu1 %v394_v16  ;;  %s407_s14 = scalar_lea.vmem %s319_s5, 16  ;;  %s411_s15 = scalar_lea.vmem %s319_s5, 32 }
   0xf   :  { %278 = vperm.xlu1 %406, %v260_v23   ;;  %p408_p0 = scmp.ne.s32.totalorder %s319_s5, %s407_s14  ;;  %p412_p1 = scmp.lt.s32.totalorder %s319_s5, %s319_s5 }
  0x10   :  { %268 = vperm.xlu0 %405, %v258_v32   ;;  %p413_p2 = scmp.lt.s32.totalorder %s411_s15, %s407_s14 }
  0x11   :  { %397 = vmatpush3.bf16.msra.mxu1 %v394_v16 }
  0x12   :  { %399 = vmatprep.subr.bf16.mxu1 %v398_v20  ;;  %p414_p3 = por %p413_p2, %p412_p1 }
  0x14   :  { %302 = vperm.xlu0 %405, %v299_v33   ;;  %p415_p4 = pnand %p414_p3, %p408_p0 }
  0x15   :  { %401 = vmatpush3.bf16.msra.mxu1 %v398_v20 }
  0x8a   :  { %v274_v41 = vpop.permute.xlu1 %273 }
  0x8b   :  { %v264_v43 = vpop.permute.xlu0 %263 }
  0x8e   :  { %v279_v42 = vpop.permute.xlu1 %278 }
  0x8f   :  { %v269_v45 = vpop.permute.xlu0 %268 }
  0x93   :  { %v303_v3 = vpop.permute.xlu0 %302 }
  0x94   :  { %v308_v5 = vrot.slane %v303_v3, %v307_v1 }
  0xe1   :  { %v358_v25 = vpop.f32.mrb[0].mxu0 }
  0xe2   :  { %v121_v26 = vadd.f32 %v358_v25, %v326_v24  ;;  %v115_v27 = vpop.f32.mrb[1].mxu0 }
  0xe3   :  { %v116_v28 = vadd.f32 %v326_v24, %v115_v27 }
  0xe4   :  { %v125_v30 = vmax.f32 %v121_v26, 0.0 }
  0xe5   :  { %v124_v29 = vmax.f32 %v116_v28, 0.0 }
  0xe7   :  { %375 = vmatprep.mubr.msk.f32.mxu1 %vm141_vm1, %v124_v29 }
  0xe8   :  { %376 = vmatmul.mubr.msk.f32.vlgmr.msra.gmra.mrb[0].mxu1 %vm141_vm1, %v125_v30 }
 0x1bb   :  { %v377_v35 = vpop.f32.mrb[0].mxu1 }
 0x1bc   :  { %v214_v36 = vpop.f32.mrb[1].mxu1  ;;  %v220_v38 = vadd.f32 %v377_v35, %v329_v34 }
 0x1bd   :  { %v215_v37 = vadd.f32 %v329_v34, %v214_v36 }
 0x1be   :  { %v224_v40 = vmax.f32 %v220_v38, 0.0 }
 0x1bf   :  { %v223_v39 = vmax.f32 %v215_v37, 0.0 }
 0x1c1   :  { %225 = vxpose.xlu1.b32.start [1/2] (short) (narrow) %v223_v39, 32 }
 0x1c5   :  { %226 = vxpose.xlu1.b32.end [2/2] (short) (narrow) %v224_v40, 32 }
 0x241   :  { %v241_v44 = vpop.trf.xlu1 }
 0x242   :  { %v281_v48 = vmul.f32 %v264_v43, %v241_v44 }
 0x244   :  { %v286_v52 = vsel %vm285_vm2, %v281_v48, 0.0 }
 0x245   :  { %v242_v46 = vpop.trf.xlu1 }
 0x246   :  { %v282_v47 = vmul.f32 %v269_v45, %v242_v46 }
 0x248   :  { %v287_v50 = vsel %vm285_vm2, %v282_v47, 0.0 }
 0x249   :  { %v243_v49 = vpop.trf.xlu1  ;;  %v288_v54 = vadd.f32 %v287_v50, %v286_v52 }
 0x24a   :  { %v283_v51 = vmul.f32 %v274_v41, %v243_v49 }
 0x24c   :  { %v289_v53 = vsel %vm285_vm2, %v283_v51, 0.0 }
 0x24d   :  { %v244_v55 = vpop.trf.xlu1  ;;  %v290_v57 = vadd.f32 %v289_v53, %v288_v54 }
 0x24e   :  { %v284_v56 = vmul.f32 %v279_v42, %v244_v55 }
 0x250   :  { %v291_v58 = vsel %vm285_vm2, %v284_v56, 0.0 }
 0x251   :  { %v292_v60 = vadd.f32 %v291_v58, %v290_v57 }
 0x253   :  { %v293_v61 = vrot.slane %v292_v60, 4 }
 0x255   :  { %v294_v63 = vadd.f32 %v293_v61, %v292_v60 }
 0x257   :  { %v295_v0 = vrot.slane %v294_v63, 2 }
 0x259   :  { %v296_v2 = vadd.f32 %v295_v0, %v294_v63 }
 0x25b   :  { %v297_v4 = vrot.slane %v296_v2, 1 }
 0x25d   :  { %v298_v6 = vadd.f32 %v297_v4, %v296_v2 }
 0x25f   :  { %v309_v7 = vadd.f32 %v308_v5, %v298_v6 }
 0x261   :  { %311 = vst.msk [vmem:[#allocation3] sm:$0x1] %vm310_vm3, %v309_v7 }
 0x262   :  { %418 = shalt.err (!%p415_p4)
}
 0x263   :  { %s419_s1 = scalar_lea.hbm %s557_s7, 16 }
 0x264   :  { %p420_p5 = scmp.ne.s32.totalorder %s557_s7, %s419_s1  ;;  %p423_p6 = scmp.lt.u32.totalorder %s419_s1, %s557_s7 }
 0x266   :  { %p425_p7 = pnand %p423_p6, %p420_p5 }
 0x268   :  { %428 = shalt.err (!%p425_p7)
}
 0x269   :  { %321 = dma.vmem_to_hbm [thread:$0]  %s319_s5, 16, %s557_s7, [#allocation4]  }
 0x26a   :  { %429 = dma.done.wait [#allocation4], 16  }
 0x26b   :  { %430 = vsyncadd [#allocation4], 4294967280 }
 0x26c   :  { %325 = vsyncpa [#allocation4], 1 }

</bundles_post_ra>
